<compile_context>
chip_gen: v7x
topology: tpu7x:2x2x1
jax: 0.10.0
libtpu: 0.0.40
codegen_flags: <defaults>
</compile_context>

<pallas_src>
import jax
import jax.numpy as jnp
from jax.experimental import pallas as pl
from jax.experimental.pallas import tpu as pltpu


def _round_up(v, m):
    return ((v + m - 1) // m) * m


def _temperature_gnn_kernel(a_ref, x_ref, wg_ref, bg_ref, w1_ref, b1_ref,
                            w2_ref, b2_ref, o_ref):
    """One row-tile of nodes: aggregate, GCN transform, fused MLP."""
    # (A_tile @ X) first: streamed intermediate is [tile, in_c] (in_c << hidden).
    # a_ref / x_ref are bf16 -> native MXU path; accumulate in f32.
    ax = jnp.dot(a_ref[...], x_ref[...], preferred_element_type=jnp.float32)
    # GCNConv weight + bias, then ReLU (all element-wise math in f32).
    h = jnp.dot(ax, wg_ref[...], preferred_element_type=jnp.float32) + bg_ref[...]
    h = jnp.maximum(h, 0.0)
    # lin1 + ReLU.
    h = jnp.dot(h, w1_ref[...], preferred_element_type=jnp.float32) + b1_ref[...]
    h = jnp.maximum(h, 0.0)
    # lin2 (output columns zero-padded to a lane-dense 128 by the wrapper).
    out = jnp.dot(h, w2_ref[...], preferred_element_type=jnp.float32) + b2_ref[...]
    o_ref[...] = out.astype(o_ref.dtype)


def temperature_gnn_forward(x, a_hat, params, *, row_tile=256):
    """Row-tiled, pipelined forward pass.  Pads N / out_channels as needed and
    slices the padding off before returning."""
    n, in_c = x.shape
    hid = params["w1"].shape[0]
    out_c = params["w2"].shape[1]

    # ---- choose the node row tile ------------------------------------------
    tile = min(row_tile, _round_up(n, 8))
    tile = max(8, _round_up(tile, 8))
    # Keep the double-buffered bf16 A_hat block <= ~16 MiB so it fits the
    # scoped VMEM budget on every generation (v7x has only 64 MiB physical).
    while tile > 8 and 2 * tile * _round_up(n, tile) * 2 > (16 << 20):
        tile = max(8, (tile // 2) // 8 * 8)
    n_pad = _round_up(n, tile)
    out_pad = _round_up(max(out_c, 128), 128)

    # ---- pad / cast inputs (zero rows & cols contribute nothing) ------------
    a_p = jnp.zeros((n_pad, n_pad), jnp.bfloat16).at[:n, :n].set(
        a_hat.astype(jnp.bfloat16))
    x_p = jnp.zeros((n_pad, in_c), jnp.bfloat16).at[:n, :].set(
        x.astype(jnp.bfloat16))
    # Lane-dense output: pad lin2 columns to 128 (zeros), slice outside.
    w2_p = jnp.zeros((hid, out_pad), jnp.float32).at[:, :out_c].set(params["w2"])
    b2_p = jnp.zeros((1, out_pad), jnp.float32).at[:, :out_c].set(params["b2"])

    wg, bg, w1, b1 = params["w_gcn"], params["b_gcn"], params["w1"], params["b1"]

    resident = lambda i: (0, 0)  # x / weights / biases stay pinned in VMEM
    grid = (n_pad // tile,)

    out_p = pl.pallas_call(
        _temperature_gnn_kernel,
        out_shape=jax.ShapeDtypeStruct((n_pad, out_pad), jnp.float32),
        grid=grid,
        in_specs=[
            pl.BlockSpec((tile, n_pad), lambda i: (i, 0)),   # A_hat row stream
            pl.BlockSpec(x_p.shape, resident),
            pl.BlockSpec(wg.shape, resident),
            pl.BlockSpec(bg.shape, resident),
            pl.BlockSpec(w1.shape, resident),
            pl.BlockSpec(b1.shape, resident),
            pl.BlockSpec(w2_p.shape, resident),
            pl.BlockSpec(b2_p.shape, resident),
        ],
        out_specs=pl.BlockSpec((tile, out_pad), lambda i: (i, 0)),
        compiler_params=pltpu.CompilerParams(
            dimension_semantics=("parallel",),        # shard row tiles over TCs
            vmem_limit_bytes=48 * 1024 * 1024,        # > v5e's 16 MiB default
        ),
    )(a_p, x_p, wg, bg, w1, b1, w2_p, b2_p)

    return out_p[:n, :out_c]


def build_normalized_adjacency(edge_index, num_nodes):
    """Glue (plain JAX): dense A_hat = D^-1/2 (A + I) D^-1/2 following PyG's
    gcn_norm with add_remaining_self_loops (existing self-loops get weight 1)."""
    src = edge_index[0]
    dst = edge_index[1]
    not_loop = (src != dst).astype(jnp.float32)
    a = jnp.zeros((num_nodes, num_nodes), jnp.float32).at[dst, src].add(not_loop)
    a = a + jnp.eye(num_nodes, dtype=jnp.float32)             # self-loops, weight 1
    deg = a.sum(axis=1)                                       # target-side degree
    dinv = jnp.where(deg > 0.0, 1.0 / jnp.sqrt(deg), 0.0)
    return a * dinv[:, None] * dinv[None, :]


def init_params(key, in_channels, hidden_channels, out_channels):
    """Deterministic synthetic parameters matching the module's shapes.
    Weights stored [in, out] so the kernel computes y = x @ W + b."""
    k = jax.random.split(key, 6)
    sc_in = 1.0 / jnp.sqrt(jnp.float32(in_channels))
    sc_hid = 1.0 / jnp.sqrt(jnp.float32(hidden_channels))
    return dict(
        w_gcn=jax.random.normal(k[0], (in_channels, hidden_channels), jnp.float32) * sc_in,
        b_gcn=jax.random.normal(k[1], (1, hidden_channels), jnp.float32) * 0.01,
        w1=jax.random.normal(k[2], (hidden_channels, hidden_channels), jnp.float32) * sc_hid,
        b1=jax.random.normal(k[3], (1, hidden_channels), jnp.float32) * 0.01,
        w2=jax.random.normal(k[4], (hidden_channels, out_channels), jnp.float32) * sc_hid,
        b2=jax.random.normal(k[5], (1, out_channels), jnp.float32) * 0.01,
    )


def reference_forward(x, a_hat, params, *, match_kernel_precision):
    """Pure-JAX reference.  If match_kernel_precision, round A_hat / x to bf16
    exactly like the kernel's dominant-stream cast (rest stays f32)."""
    if match_kernel_precision:
        a = a_hat.astype(jnp.bfloat16).astype(jnp.float32)
        xx = x.astype(jnp.bfloat16).astype(jnp.float32)
    else:
        a, xx = a_hat, x
    h = (a @ xx) @ params["w_gcn"] + params["b_gcn"]
    h = jnp.maximum(h, 0.0)
    h = jnp.maximum(h @ params["w1"] + params["b1"], 0.0)
    return h @ params["w2"] + params["b2"]


if __name__ == "__main__":
    key = jax.random.PRNGKey(0)

    # Small shapes implied by the module: N=16 nodes, channels 4 -> 32 -> 4.
    N, E = 16, 48
    in_c, hid_c, out_c = 4, 32, 4

    k_x, k_e, k_p, k_x2, k_e2 = jax.random.split(key, 5)
    x = jax.random.normal(k_x, (N, in_c), jnp.float32)          # data.x
    edge_index = jax.random.randint(k_e, (2, E), 0, N)          # data.edge_index
    params = init_params(k_p, in_c, hid_c, out_c)
    a_hat = build_normalized_adjacency(edge_index, N)

    out = jax.block_until_ready(temperature_gnn_forward(x, a_hat, params))
    assert out.shape == (N, out_c) and out.dtype == jnp.float32

    # Tight check against a precision-matched reference (same bf16 A_hat/x).
    ref_m = reference_forward(x, a_hat, params, match_kernel_precision=True)
    assert jnp.allclose(out, ref_m, atol=2e-3, rtol=2e-3)
    # Loose check against the full-f32 module semantics.
    ref_f = reference_forward(x, a_hat, params, match_kernel_precision=False)
    assert jnp.allclose(out, ref_f, atol=1e-1, rtol=1e-1)

    # Larger multi-tile case: exercises the row-tiled "parallel" grid and the
    # node padding path (N=200 with row_tile=64 -> N_pad=256, grid=(4,)).
    N2, E2 = 200, 1200
    x2 = jax.random.normal(k_x2, (N2, in_c), jnp.float32)
    edge_index2 = jax.random.randint(k_e2, (2, E2), 0, N2)
    a_hat2 = build_normalized_adjacency(edge_index2, N2)
    out2 = jax.block_until_ready(
        temperature_gnn_forward(x2, a_hat2, params, row_tile=64))
    assert out2.shape == (N2, out_c)
    ref2 = reference_forward(x2, a_hat2, params, match_kernel_precision=True)
    assert jnp.allclose(out2, ref2, atol=2e-3, rtol=2e-3)

    # TODO(synk): at these toy sizes plain XLA fusion is competitive; the
    # Pallas path pays off once N (and/or a batch of graphs) grows.
    print("KERNEL_OK")
</pallas_src>

<mosaic_0001>
module attributes {stable_mosaic.version = 11 : i64} {
  func.func @_temperature_gnn_kernel(%arg0: i32, %arg1: memref<16x16xbf16, #tpu.memory_space<vmem>>, %arg2: memref<16x4xbf16, #tpu.memory_space<vmem>>, %arg3: memref<4x32xf32, #tpu.memory_space<vmem>>, %arg4: memref<1x32xf32, #tpu.memory_space<vmem>>, %arg5: memref<32x32xf32, #tpu.memory_space<vmem>>, %arg6: memref<1x32xf32, #tpu.memory_space<vmem>>, %arg7: memref<32x128xf32, #tpu.memory_space<vmem>>, %arg8: memref<1x128xf32, #tpu.memory_space<vmem>>, %arg9: memref<16x128xf32, #tpu.memory_space<vmem>>) attributes {dimension_semantics = [#tpu.dimension_semantics<parallel>], iteration_bounds = array<i64: 1>, scalar_prefetch = 0 : i64, scratch_operands = 0 : i64, tpu.core_type = #tpu.core_type<tc>, window_params = [{transform_indices = @transform_0, window_bounds = array<i64: 16, 16>}, {pipeline_mode = #tpu.pipeline_mode<synchronous>, transform_indices = @transform_1, window_bounds = array<i64: 16, 4>}, {pipeline_mode = #tpu.pipeline_mode<synchronous>, transform_indices = @transform_2, window_bounds = array<i64: 4, 32>}, {pipeline_mode = #tpu.pipeline_mode<synchronous>, transform_indices = @transform_3, window_bounds = array<i64: 1, 32>}, {pipeline_mode = #tpu.pipeline_mode<synchronous>, transform_indices = @transform_4, window_bounds = array<i64: 32, 32>}, {pipeline_mode = #tpu.pipeline_mode<synchronous>, transform_indices = @transform_5, window_bounds = array<i64: 1, 32>}, {pipeline_mode = #tpu.pipeline_mode<synchronous>, transform_indices = @transform_6, window_bounds = array<i64: 32, 128>}, {pipeline_mode = #tpu.pipeline_mode<synchronous>, transform_indices = @transform_7, window_bounds = array<i64: 1, 128>}, {transform_indices = @transform_8, window_bounds = array<i64: 16, 128>}]} {
    %c0 = arith.constant 0 : index
    %c0_0 = arith.constant 0 : index
    %0 = vector.load %arg1[%c0, %c0_0] : memref<16x16xbf16, #tpu.memory_space<vmem>>, vector<16x16xbf16>
    %c0_1 = arith.constant 0 : index
    %c0_2 = arith.constant 0 : index
    %1 = vector.load %arg2[%c0_1, %c0_2] : memref<16x4xbf16, #tpu.memory_space<vmem>>, vector<16x4xbf16>
    %cst = arith.constant dense<0.000000e+00> : vector<16x4xf32>
    %2 = tpu.matmul %0, %1, %cst {dimension_numbers = #tpu.dot_dimension_numbers<[1], [0], [0], [1], [0, 0, 1, 1], [], []>} : vector<16x16xbf16>, vector<16x4xbf16>, vector<16x4xf32> -> vector<16x4xf32>
    %c0_3 = arith.constant 0 : index
    %c0_4 = arith.constant 0 : index
    %3 = vector.load %arg3[%c0_3, %c0_4] : memref<4x32xf32, #tpu.memory_space<vmem>>, vector<4x32xf32>
    %cst_5 = arith.constant dense<0.000000e+00> : vector<16x32xf32>
    %4 = tpu.matmul %2, %3, %cst_5 {dimension_numbers = #tpu.dot_dimension_numbers<[1], [0], [0], [1], [0, 0, 1, 1], [], []>} : vector<16x4xf32>, vector<4x32xf32>, vector<16x32xf32> -> vector<16x32xf32>
    %c0_6 = arith.constant 0 : index
    %c0_7 = arith.constant 0 : index
    %5 = vector.load %arg4[%c0_6, %c0_7] : memref<1x32xf32, #tpu.memory_space<vmem>>, vector<1x32xf32>
    %6 = vector.broadcast %5 : vector<1x32xf32> to vector<16x32xf32>
    %7 = arith.addf %4, %6 : vector<16x32xf32>
    %cst_8 = arith.constant 0.000000e+00 : f32
    %8 = vector.broadcast %cst_8 : f32 to vector<16x32xf32>
    %9 = arith.maximumf %7, %8 : vector<16x32xf32>
    %c0_9 = arith.constant 0 : index
    %c0_10 = arith.constant 0 : index
    %10 = vector.load %arg5[%c0_9, %c0_10] : memref<32x32xf32, #tpu.memory_space<vmem>>, vector<32x32xf32>
    %cst_11 = arith.constant dense<0.000000e+00> : vector<16x32xf32>
    %11 = tpu.matmul %9, %10, %cst_11 {dimension_numbers = #tpu.dot_dimension_numbers<[1], [0], [0], [1], [0, 0, 1, 1], [], []>} : vector<16x32xf32>, vector<32x32xf32>, vector<16x32xf32> -> vector<16x32xf32>
    %c0_12 = arith.constant 0 : index
    %c0_13 = arith.constant 0 : index
    %12 = vector.load %arg6[%c0_12, %c0_13] : memref<1x32xf32, #tpu.memory_space<vmem>>, vector<1x32xf32>
    %13 = vector.broadcast %12 : vector<1x32xf32> to vector<16x32xf32>
    %14 = arith.addf %11, %13 : vector<16x32xf32>
    %cst_14 = arith.constant 0.000000e+00 : f32
    %15 = vector.broadcast %cst_14 : f32 to vector<16x32xf32>
    %16 = arith.maximumf %14, %15 : vector<16x32xf32>
    %c0_15 = arith.constant 0 : index
    %c0_16 = arith.constant 0 : index
    %17 = vector.load %arg7[%c0_15, %c0_16] : memref<32x128xf32, #tpu.memory_space<vmem>>, vector<32x128xf32>
    %cst_17 = arith.constant dense<0.000000e+00> : vector<16x128xf32>
    %18 = tpu.matmul %16, %17, %cst_17 {dimension_numbers = #tpu.dot_dimension_numbers<[1], [0], [0], [1], [0, 0, 1, 1], [], []>} : vector<16x32xf32>, vector<32x128xf32>, vector<16x128xf32> -> vector<16x128xf32>
    %c0_18 = arith.constant 0 : index
    %c0_19 = arith.constant 0 : index
    %19 = vector.load %arg8[%c0_18, %c0_19] : memref<1x128xf32, #tpu.memory_space<vmem>>, vector<1x128xf32>
    %20 = vector.broadcast %19 : vector<1x128xf32> to vector<16x128xf32>
    %21 = arith.addf %18, %20 : vector<16x128xf32>
    %c0_20 = arith.constant 0 : index
    %c0_21 = arith.constant 0 : index
    %22 = vector.load %arg9[%c0_20, %c0_21] : memref<16x128xf32, #tpu.memory_space<vmem>>, vector<16x128xf32>
    tpu.vector_store %arg9[%c0_20, %c0_21], %21 {strides = array<i32>} : memref<16x128xf32, #tpu.memory_space<vmem>>, vector<16x128xf32>,
    return
  }
  func.func @transform_0(%arg0: i32) -> (i32, i32) {
    %c0_i32 = arith.constant 0 : i32
    %c0_i32_0 = arith.constant 0 : i32
    return %arg0, %c0_i32 : i32, i32
  }
  func.func @transform_1(%arg0: i32) -> (i32, i32) {
    %c0_i32 = arith.constant 0 : i32
    %c0_i32_0 = arith.constant 0 : i32
    %c0_i32_1 = arith.constant 0 : i32
    return %c0_i32, %c0_i32_0 : i32, i32
  }
  func.func @transform_2(%arg0: i32) -> (i32, i32) {
    %c0_i32 = arith.constant 0 : i32
    %c0_i32_0 = arith.constant 0 : i32
    %c0_i32_1 = arith.constant 0 : i32
    return %c0_i32, %c0_i32_0 : i32, i32
  }
  func.func @transform_3(%arg0: i32) -> (i32, i32) {
    %c0_i32 = arith.constant 0 : i32
    %c0_i32_0 = arith.constant 0 : i32
    %c0_i32_1 = arith.constant 0 : i32
    return %c0_i32, %c0_i32_0 : i32, i32
  }
  func.func @transform_4(%arg0: i32) -> (i32, i32) {
    %c0_i32 = arith.constant 0 : i32
    %c0_i32_0 = arith.constant 0 : i32
    %c0_i32_1 = arith.constant 0 : i32
    return %c0_i32, %c0_i32_0 : i32, i32
  }
  func.func @transform_5(%arg0: i32) -> (i32, i32) {
    %c0_i32 = arith.constant 0 : i32
    %c0_i32_0 = arith.constant 0 : i32
    %c0_i32_1 = arith.constant 0 : i32
    return %c0_i32, %c0_i32_0 : i32, i32
  }
  func.func @transform_6(%arg0: i32) -> (i32, i32) {
    %c0_i32 = arith.constant 0 : i32
    %c0_i32_0 = arith.constant 0 : i32
    %c0_i32_1 = arith.constant 0 : i32
    return %c0_i32, %c0_i32_0 : i32, i32
  }
  func.func @transform_7(%arg0: i32) -> (i32, i32) {
    %c0_i32 = arith.constant 0 : i32
    %c0_i32_0 = arith.constant 0 : i32
    %c0_i32_1 = arith.constant 0 : i32
    return %c0_i32, %c0_i32_0 : i32, i32
  }
  func.func @transform_8(%arg0: i32) -> (i32, i32) {
    %c0_i32 = arith.constant 0 : i32
    %c0_i32_0 = arith.constant 0 : i32
    return %arg0, %c0_i32 : i32, i32
  }
}

</mosaic_0001>

<bundles_post_ra>
// kernel: tpu_custom_call.1
= control target key start
LH: loop header
LB: loop body
LE: loop exit
PB: predicated region body
PF: predicated region fallthrough
CT: control target
= control target key end

     0   :  { %13 = vsyncpa [#allocation3], 0  ;;  %s854_s0 = inlined_call_operand.hbm [shape: bf16[16,16], index: 0, kind: input, shape index: {}]   ;;  %s855_s1 = inlined_call_operand.vmem [shape: bf16[16,4], index: 1, kind: input, shape index: {}]   ;;  %s856_s2 = inlined_call_operand.hbm [shape: f32[4,32], index: 2, kind: input, shape index: {}]   ;;  %s857_s3 = inlined_call_operand.hbm [shape: f32[1,32], index: 3, kind: input, shape index: {}]   ;;  %s858_s4 = inlined_call_operand.hbm [shape: f32[32,32], index: 4, kind: input, shape index: {}]   ;;  %s859_s5 = inlined_call_operand.hbm [shape: f32[1,32], index: 5, kind: input, shape index: {}]   ;;  %s860_s6 = inlined_call_operand.vmem [shape: f32[32,128], index: 6, kind: input, shape index: {}]   ;;  %s861_s7 = inlined_call_operand.vmem [shape: f32[1,128], index: 7, kind: input, shape index: {}]   ;;  %s862_s8 = inlined_call_operand.hbm [shape: f32[16,128], index: 8, kind: output, shape index: {}]  }
   0x1   :  { %14 = vsyncpa [#allocation6], 0 }
   0x2   :  { %15 = vsyncpa [#allocation9], 0 }
   0x3   :  { %16 = vsyncpa [#allocation4], 0  ;;  %s690_s27 = smov [#allocation5]   ;;  %s691_s29 = smov [#allocation8]  }
   0x4   :  { %s37_s28 = sshll.u32 %s690_s27, 4  ;;  %s56_s30 = sshll.u32 %s691_s29, 4  ;;  %s38_s28 = int_to_ptr.vmem [resolvable:$true] %s37_s28  ;;  %s747_s30 = int_to_ptr.vmem [resolvable:$true] %s56_s30 }
   0x5   :  { %s550_s11 = scalar_lea.hbm %s856_s2, 64 }
   0x6   :  { %p551_p0 = scmp.ne.s32.totalorder %s856_s2, %s550_s11  ;;  %p554_p1 = scmp.lt.u32.totalorder %s550_s11, %s856_s2 }
   0x8   :  { %p556_p2 = pnand %p554_p1, %p551_p0 }
   0xa   :  { %559 = shalt.err (!%p556_p2)
}
   0xb   :  { %s560_s16 = scalar_lea.vmem %s38_s28, 64  ;;  %p565_p4 = scmp.lt.s32.totalorder %s38_s28, %s38_s28 }
   0xc   :  { %p561_p3 = scmp.ne.s32.totalorder %s38_s28, %s560_s16  ;;  %p566_p5 = scmp.lt.s32.totalorder %s560_s16, %s560_s16 }
   0xe   :  { %p567_p6 = por %p566_p5, %p565_p4 }
  0x10   :  { %p568_p7 = pnand %p567_p6, %p561_p3 }
  0x12   :  { %571 = shalt.err (!%p568_p7)
}
  0x13   :  { %40 = dma.hbm_to_vmem [thread:$0]  %s856_s2, 64, %s38_s28, [#allocation6]  }
  0x14   :  { %s572_s21 = scalar_lea.hbm %s858_s4, 512 }
  0x15   :  { %p573_p8 = scmp.ne.s32.totalorder %s858_s4, %s572_s21  ;;  %p576_p9 = scmp.lt.u32.totalorder %s572_s21, %s858_s4 }
  0x17   :  { %p578_p10 = pnand %p576_p9, %p573_p8 }
  0x19   :  { %581 = shalt.err (!%p578_p10)
}
  0x1a   :  { %s582_s26 = scalar_lea.vmem %s747_s30, 512  ;;  %p587_p12 = scmp.lt.s32.totalorder %s747_s30, %s747_s30 }
  0x1b   :  { %p583_p11 = scmp.ne.s32.totalorder %s747_s30, %s582_s26  ;;  %p588_p13 = scmp.lt.s32.totalorder %s582_s26, %s582_s26 }
  0x1d   :  { %p589_p0 = por %p588_p13, %p587_p12 }
  0x1f   :  { %p590_p1 = pnand %p589_p0, %p583_p11 }
  0x21   :  { %593 = shalt.err (!%p590_p1)
}
  0x22   :  { %s692_s2 = smov 128   ;;  %s693_s27 = smov 8  }
  0x23   :  { %62 = dma.hbm_to_vmem [thread:$0]  %s858_s4, 512, %s747_s30, [#allocation9], %s692_s2, %s692_s2, %s693_s27  }
  0x24   :  { %s694_s9 = smov [#allocation2]   ;;  %s594_s13 = scalar_lea.hbm %s854_s0, 128 }
  0x25   :  { %s22_s10 = sshll.u32 %s694_s9, 4  ;;  %p595_p2 = scmp.ne.s32.totalorder %s854_s0, %s594_s13  ;;  %s23_s10 = int_to_ptr.vmem [resolvable:$true] %s22_s10 }
  0x26   :  { %p598_p3 = scmp.lt.u32.totalorder %s594_s13, %s854_s0 }
  0x28   :  { %p600_p4 = pnand %p598_p3, %p595_p2 }
  0x2a   :  { %603 = shalt.err (!%p600_p4)
}
  0x2b   :  { %s604_s18 = scalar_lea.vmem %s23_s10, 128  ;;  %p609_p6 = scmp.lt.s32.totalorder %s23_s10, %s23_s10 }
  0x2c   :  { %p605_p5 = scmp.ne.s32.totalorder %s23_s10, %s604_s18  ;;  %p610_p7 = scmp.lt.s32.totalorder %s604_s18, %s604_s18 }
  0x2e   :  { %p611_p8 = por %p610_p7, %p609_p6 }
  0x30   :  { %p612_p9 = pnand %p611_p8, %p605_p5 }
  0x32   :  { %615 = shalt.err (!%p612_p9)
}
  0x33   :  { %s695_s4 = smov 64   ;;  %s696_s30 = smov 4  }
  0x34   :  { %28 = dma.hbm_to_vmem [thread:$0]  %s854_s0, 128, %s23_s10, [#allocation3], %s695_s4, %s695_s4, %s696_s30  }
  0x35   :  { %s697_s21 = smov [#allocation7]   ;;  %s698_s23 = smov [#allocation10]  }
  0x36   :  { %s47_s22 = sshll.u32 %s697_s21, 4  ;;  %s69_s24 = sshll.u32 %s698_s23, 4  ;;  %s48_s22 = int_to_ptr.vmem [resolvable:$true] %s47_s22  ;;  %s70_s24 = int_to_ptr.vmem [resolvable:$true] %s69_s24 }
  0x37   :  { %s616_s28 = scalar_lea.hbm %s857_s3, 16 }
  0x38   :  { %p617_p10 = scmp.ne.s32.totalorder %s857_s3, %s616_s28  ;;  %p620_p11 = scmp.lt.u32.totalorder %s616_s28, %s857_s3 }
  0x3a   :  { %p622_p12 = pnand %p620_p11, %p617_p10 }
  0x3c   :  { %625 = shalt.err (!%p622_p12)
}
  0x3d   :  { %s626_s0 = scalar_lea.vmem %s48_s22, 16  ;;  %s630_s10 = scalar_lea.vmem %s48_s22, 32 }
  0x3e   :  { %p627_p13 = scmp.ne.s32.totalorder %s48_s22, %s626_s0  ;;  %p631_p0 = scmp.lt.s32.totalorder %s48_s22, %s48_s22 }
  0x3f   :  { %p632_p1 = scmp.lt.s32.totalorder %s630_s10, %s626_s0 }
  0x41   :  { %p633_p2 = por %p632_p1, %p631_p0 }
  0x43   :  { %p634_p3 = pnand %p633_p2, %p627_p13 }
  0x45   :  { %637 = shalt.err (!%p634_p3)
}
  0x46   :  { %50 = dma.hbm_to_vmem [thread:$0]  %s857_s3, 16, %s48_s22, [#allocation6]  }
  0x47   :  { %s638_s17 = scalar_lea.hbm %s859_s5, 16 }
  0x48   :  { %p639_p4 = scmp.ne.s32.totalorder %s859_s5, %s638_s17  ;;  %p642_p5 = scmp.lt.u32.totalorder %s638_s17, %s859_s5 }
  0x4a   :  { %p644_p6 = pnand %p642_p5, %p639_p4 }
  0x4c   :  { %647 = shalt.err (!%p644_p6)
}
  0x4d   :  { %s648_s20 = scalar_lea.vmem %s70_s24, 16  ;;  %s652_s21 = scalar_lea.vmem %s70_s24, 32 }
  0x4e   :  { %p649_p7 = scmp.ne.s32.totalorder %s70_s24, %s648_s20  ;;  %p653_p8 = scmp.lt.s32.totalorder %s70_s24, %s70_s24 }
  0x4f   :  { %p654_p9 = scmp.lt.s32.totalorder %s652_s21, %s648_s20 }
  0x51   :  { %p655_p10 = por %p654_p9, %p653_p8 }
  0x53   :  { %p656_p11 = pnand %p655_p10, %p649_p7 }
  0x55   :  { %659 = shalt.err (!%p656_p11)
}
  0x56   :  { %72 = dma.hbm_to_vmem [thread:$0]  %s859_s5, 16, %s70_s24, [#allocation9]  }
  0x57   :  { %682 = dma.done.wait [#allocation3], 128  }
  0x58   :  { %683 = vsyncadd [#allocation3], 4294967168 }
  0x59   :  { %684 = dma.done.wait [#allocation6], 80  }
  0x5a   :  { %685 = vsyncadd [#allocation6], 4294967216 }
  0x5b   :  { %686 = dma.done.wait [#allocation9], 528  }
  0x5c   :  { %687 = vsyncadd [#allocation9], 4294966768  ;;  %v699_v0 = vmov 0.0   ;;  %vm700_vm0 = vmmov 0   ;;  %v548_v1 = vld [vmem:[%s855_s1] sm:$0xff]   ;;  %vm108_vm1 = vcmask 130048  }
  0x5d   :  { %487 = vmatprep.subr.bf16.mxu0 %v699_v0  ;;  %489 = vmatprep.mubr.msk.bf16.mxu0 %vm700_vm0, %v699_v0  ;;  %v549_v2 = vld [vmem:[#allocation2] sm:$0xff]   ;;  %v153_v3 = vld [vmem:[#allocation5] sm:$0xf]  ;;  %vm168_vm2 = vcmask 1043456   ;;  %v249_v4 = vld [vmem:[#allocation8] sm:$0xff]  ;;  %vm161_vm3 = vcmask 31744  }
  0x5e   :  { %488 = vmatpush3.bf16.msra.mxu0 %v548_v1  ;;  %493 = vmatprep.subr.msk.mxu1 %vm168_vm2, %v153_v3  ;;  %v250_v5 = vld [vmem:[#allocation8 + $0x8] sm:$0xff]  ;;  %v251_v11 = vld [vmem:[#allocation8 + $0x10] sm:$0xff]  ;;  %v252_v12 = vld [vmem:[#allocation8 + $0x18] sm:$0xff]  ;;  %vm260_vm4 = vcmask 261120   ;;  %s701_s10 = smov [#allocation11]  }
  0x5f   :  { %494 = vmatpush3.msk.msra.mxu1 %vm168_vm2, %v153_v3  ;;  %v520_v6 = vpack.c.bf16 %v250_v5, %v249_v4  ;;  %v524_v13 = vpack.c.bf16 %v252_v12, %v251_v11  ;;  %v344_v14 = vld [vmem:[%s860_s6] sm:$0xff]  ;;  %v345_v15 = vld [vmem:[%s860_s6 + $0x8] sm:$0xff]  ;;  %v346_v24 = vld [vmem:[%s860_s6 + $0x10] sm:$0xff] }
  0x60   :  { %v528_v16 = vpack.c.bf16 %v345_v15, %v344_v14  ;;  %v460_v17 = vld [vmem:[#allocation7] ss:$0 sm:$0xff]  ;;  %v347_v25 = vld [vmem:[%s860_s6 + $0x18] sm:$0xff]  ;;  %v464_v27 = vld [vmem:[#allocation10] ss:$0 sm:$0xff]  ;;  %s443_s6 = sshll.u32 %s701_s10, 4  ;;  %s444_s6 = int_to_ptr.vmem [resolvable:$true] %s443_s6 }
  0x61   :  { %490 = vmatmul.mubr.msk.bf16.vlgmr.msra.gmra.mrb[0].mxu0 %vm108_vm1, %v549_v2  ;;  %521 = vmatprep.subr.bf16.mxu1 %v520_v6  ;;  %v532_v26 = vpack.c.bf16 %v347_v25, %v346_v24  ;;  %v467_v34 = vld [vmem:[%s861_s7] ss:$0 sm:$0xff]  ;;  %s660_s13 = scalar_lea.vmem %s444_s6, 256  ;;  %p665_p13 = scmp.lt.s32.totalorder %s444_s6, %s444_s6 }
  0x62   :  { %529 = vmatprep.subr.bf16.mxu0 %v528_v16  ;;  %p661_p12 = scmp.ne.s32.totalorder %s444_s6, %s660_s13  ;;  %p666_p0 = scmp.lt.s32.totalorder %s660_s13, %s660_s13 }
  0x63   :  { %531 = vmatpush3.bf16.msra.mxu0 %v528_v16 }
  0x64   :  { %533 = vmatprep.subr.bf16.mxu0 %v532_v26  ;;  %p667_p1 = por %p666_p0, %p665_p13 }
  0x66   :  { %p668_p2 = pnand %p667_p1, %p661_p12 }
  0x67   :  { %535 = vmatpush3.bf16.msra.mxu0 %v532_v26 }
 0x134   :  { %v146_v7 = vpop.f32.mrb[0].mxu0 }
 0x135   :  { %v491_v8 = vpop.f32.mrb[1].mxu0  ;;  %495 = vmatprep.mubr.msk.f32.mxu1 %vm161_vm3, %v146_v7 }
 0x136   :  { %v149_v9 = vpop.f32.mrb[2].mxu0 }
 0x137   :  { %v492_v10 = vpop.f32.mrb[3].mxu0  ;;  %496 = vmatmul.mubr.msk.f32.vlgmr.msra.gmra.mrb[0].mxu1 %vm161_vm3, %v149_v9 }
 0x138   :  { %523 = vmatpush3.bf16.msra.mxu1 %v520_v6 }
 0x139   :  { %525 = vmatprep.subr.bf16.mxu1 %v524_v13 }
 0x13c   :  { %527 = vmatpush3.bf16.msra.mxu1 %v524_v13 }
 0x20a   :  { %v497_v18 = vpop.f32.mrb[0].mxu1 }
 0x20b   :  { %v244_v19 = vadd.f32 %v497_v18, %v460_v17  ;;  %v238_v20 = vpop.f32.mrb[1].mxu1 }
 0x20c   :  { %v239_v21 = vadd.f32 %v460_v17, %v238_v20 }
 0x20d   :  { %v248_v23 = vmax.f32 %v244_v19, 0.0 }
 0x20e   :  { %v247_v22 = vmax.f32 %v239_v21, 0.0 }
 0x210   :  { %506 = vmatprep.mubr.msk.f32.mxu1 %vm260_vm4, %v247_v22 }
 0x211   :  { %507 = vmatmul.mubr.msk.f32.vlgmr.msra.gmra.mrb[2].mxu1 %vm260_vm4, %v248_v23 }
 0x2e4   :  { %v508_v28 = vpop.f32.mrb[2].mxu1 }
 0x2e5   :  { %v339_v29 = vadd.f32 %v508_v28, %v464_v27  ;;  %v333_v30 = vpop.f32.mrb[3].mxu1 }
 0x2e6   :  { %v334_v31 = vadd.f32 %v464_v27, %v333_v30 }
 0x2e7   :  { %v343_v33 = vmax.f32 %v339_v29, 0.0 }
 0x2e8   :  { %v342_v32 = vmax.f32 %v334_v31, 0.0 }
 0x2ea   :  { %517 = vmatprep.mubr.msk.f32.mxu0 %vm260_vm4, %v342_v32 }
 0x2eb   :  { %518 = vmatmul.mubr.msk.f32.vlgmr.msra.gmra.mrb[4].mxu0 %vm260_vm4, %v343_v33 }
 0x3be   :  { %v519_v35 = vpop.f32.mrb[4].mxu0 }
 0x3bf   :  { %v433_v36 = vadd.f32 %v519_v35, %v467_v34  ;;  %v427_v37 = vpop.f32.mrb[5].mxu0 }
 0x3c0   :  { %v428_v38 = vadd.f32 %v467_v34, %v427_v37 }
 0x3c1   :  { %437 = vst [vmem:[#allocation11 + $0x8] sm:$0xff] %v433_v36 }
 0x3c2   :  { %436 = vst [vmem:[#allocation11] sm:$0xff] %v428_v38 }
 0x3c3   :  { %671 = shalt.err (!%p668_p2)
}
 0x3c4   :  { %s672_s7 = scalar_lea.hbm %s862_s8, 256 }
 0x3c5   :  { %p673_p3 = scmp.ne.s32.totalorder %s862_s8, %s672_s7  ;;  %p676_p4 = scmp.lt.u32.totalorder %s672_s7, %s862_s8 }
 0x3c7   :  { %p678_p5 = pnand %p676_p4, %p673_p3 }
 0x3c9   :  { %681 = shalt.err (!%p678_p5)
}
 0x3ca   :  { %449 = dma.vmem_to_hbm [thread:$0]  %s444_s6, 256, %s862_s8, [#allocation4], %s692_s2, %s692_s2, %s693_s27  }
 0x3cb   :  { %688 = dma.done.wait [#allocation4], 256  }
 0x3cc   :  { %689 = vsyncadd [#allocation4], 4294967040 }
 0x3cd   :  { %453 = vsyncpa [#allocation3], 1 }
 0x3ce   :  { %454 = vsyncpa [#allocation6], 1 }
 0x3cf   :  { %455 = vsyncpa [#allocation9], 1 }
 0x3d0   :  { %456 = vsyncpa [#allocation4], 1 }

</bundles_post_ra>
